<compile_context>
chip_gen: v7x
topology: tpu7x:2x2x1
jax: 0.10.0
libtpu: 0.0.40
codegen_flags: <defaults>
</compile_context>

<pallas_src>
from functools import partial

import jax
import jax.numpy as jnp
from jax.experimental import pallas as pl
from jax.experimental.pallas import tpu as pltpu

# VideoTransform(subset='test') constants (auto_avsr convention):
#   grayscale (ITU-R 601 weights), x / 255.0, Normalize(mean=0.421, std=0.165)
_MEAN = 0.421
_STD = 0.165
_GRAY_R, _GRAY_G, _GRAY_B = 0.299, 0.587, 0.114


def _round_up(x, m):
    return (x + m - 1) // m * m


def _vmem_capacity_bytes():
    """Physical VMEM of the current chip; conservative 64 MiB (v7x) fallback."""
    try:
        info = pltpu.get_tpu_info()
        cap = getattr(info, "vmem_capacity_bytes", None)
        if cap:
            return int(cap)
    except Exception:
        pass
    return 64 * 1024 * 1024


def _choose_tiles(T, D, V, vmem_budget_bytes):
    """Tile plan: M collapsed to one block, large lane-dense N/K tiles.

    tm multiple of 32 (8-bit activation packing), tn/tk multiples of 128.
    Shrinks K -> N -> M until the double/triple-buffered working set fits the
    per-generation VMEM budget (64 MiB on v7x, 128 MiB on v5e/v6e).
    """
    tm = _round_up(max(T, 1), 32)
    vp128 = _round_up(max(V, 1), 128)
    tn = min(512, vp128)
    if vp128 > 128:
        # Keep >= 2 N blocks so v7x's second TensorCore gets a parallel axis.
        tn = min(tn, max(128, _round_up(vp128 // 2, 128)))
    tk = min(2048, _round_up(max(D, 1), 128))

    def working_set(tm_, tn_, tk_):
        kblocks = pl.cdiv(max(D, 1), tk_)
        wbuf = 3 if kblocks >= 3 else 2        # Buffered(3) only when >=3 K steps
        return (2 * tm_ * tk_                  # 8-bit activations, double-buffered
                + wbuf * tk_ * tn_ * 2         # bf16 folded weights
                + 2 * tn_ * 4                  # f32 bias
                + 2 * tm_ * tn_ * 4)           # f32 output tile

    while working_set(tm, tn, tk) > vmem_budget_bytes:
        if tk > 512:
            tk = max(512, _round_up(tk // 2, 128))
        elif tn > 128:
            tn = max(128, _round_up(tn // 2, 128))
        elif tm > 32:
            tm = max(32, _round_up(tm // 2, 32))
        else:
            break
    return tm, tn, tk


def fold_video_transform_into_head(w, b, *, channels, tn, tk):
    """Fold permute + grayscale + /255 + Normalize into the head weights.

    Exact affine fold (up to f32/bf16 rounding); done once, offline.
    Returns padded bf16 W' of shape (Dp, Vp) and f32 bias of shape (1, Vp).
    """
    d_hw, vocab = w.shape
    gray = jnp.array([_GRAY_R, _GRAY_G, _GRAY_B], jnp.float32)
    scale = gray / (255.0 * _STD)                                   # (C,)
    # w_fold[(p, c), v] = scale[c] * w[p, v] -- channel fastest, matching THWC flatten.
    w_fold = (w[:, None, :] * scale[None, :, None]).reshape(d_hw * channels, vocab)
    b_fold = b - (_MEAN / _STD) * jnp.sum(w, axis=0)                # (V,)

    d = d_hw * channels
    dp = _round_up(d, tk)
    vp = _round_up(vocab, tn)
    # Zero-pad: padded K rows contribute nothing; padded vocab columns are
    # sliced off before argmax, so no sentinel bias is needed.
    w_fold = jnp.pad(w_fold, ((0, dp - d), (0, vp - vocab)))
    b_fold = jnp.pad(b_fold, (0, vp - vocab))
    return w_fold.astype(jnp.bfloat16), b_fold.reshape(1, vp).astype(jnp.float32)


def fused_head_kernel(x_ref, w_ref, b_ref, o_ref):
    # x_ref: (tm, tk) int8 view of uint8 video bytes
    # w_ref: (tk, tn) bf16 folded weights
    # b_ref: (1, tn)  f32 folded bias
    # o_ref: (tm, tn) f32 logits; resident across the K axis (acts as the accumulator)
    k = pl.program_id(2)

    @pl.when(k == 0)
    def _init():
        # Bias folded into the accumulator init -> no epilogue add, no scratch.
        o_ref[...] = jnp.broadcast_to(b_ref[...], o_ref.shape)

    # int8 view -> f32, undo the two's-complement wrap (bytes 128..255 became
    # negative), then bf16 for the MXU. All values 0..255 are exact; the VPU
    # casts are hidden under the HBM-bound W' stream.
    xi = x_ref[...].astype(jnp.float32)
    xu = jnp.where(xi < 0.0, xi + 256.0, xi)
    o_ref[...] += jnp.dot(
        xu.astype(jnp.bfloat16), w_ref[...], preferred_element_type=jnp.float32
    )


def fused_transform_head(x_i8, w_bf16, b_f32, *, tm, tn, tk, vmem_limit):
    """Tiled 8-bit-activation x bf16-weight matmul, f32 accumulation:
       logits = dequant(x) @ W' + b'."""
    Tp, Dp = x_i8.shape
    Vp = w_bf16.shape[1]
    gm, gn, gk = Tp // tm, Vp // tn, Dp // tk

    if gk >= 3:
        # Deeper prefetch only on the dominant (weight) stream.
        w_spec = pl.BlockSpec((tk, tn), lambda i, j, k: (k, j),
                              pipeline_mode=pl.Buffered(3))
    else:
        w_spec = pl.BlockSpec((tk, tn), lambda i, j, k: (k, j))

    return pl.pallas_call(
        fused_head_kernel,
        out_shape=jax.ShapeDtypeStruct((Tp, Vp), jnp.float32),
        grid_spec=pltpu.PrefetchScalarGridSpec(
            num_scalar_prefetch=0,
            grid=(gm, gn, gk),
            in_specs=[
                pl.BlockSpec((tm, tk), lambda i, j, k: (i, k)),
                w_spec,
                pl.BlockSpec((1, tn), lambda i, j, k: (0, j)),
            ],
            out_specs=pl.BlockSpec((tm, tn), lambda i, j, k: (i, j)),
        ),
        compiler_params=pltpu.CompilerParams(
            dimension_semantics=("parallel", "parallel", "arbitrary"),
            vmem_limit_bytes=vmem_limit,
        ),
    )(x_i8, w_bf16, b_f32)


@partial(jax.jit, static_argnames=("vocab", "tm", "tn", "tk", "vmem_limit"))
def inference_pipeline(video_thwc_u8, w_fold, b_fold, *, vocab, tm, tn, tk,
                       vmem_limit):
    """Numeric portion of InferencePipeline.forward on an already-decoded,
    already-cropped uint8 THWC video tensor."""
    T, H, W, C = video_thwc_u8.shape
    D = H * W * C
    Tp = _round_up(T, tm)
    Dp = w_fold.shape[0]

    # No permute, no f32/bf16 cast, no intermediate grayscale tensor in HBM:
    # the channel handling lives in the folded weights and the dequant lives in
    # the kernel. Only a cheap 1 B/elem bitcast + zero pad of the raw bytes.
    x = video_thwc_u8.reshape(T, D)
    x = jax.lax.bitcast_convert_type(x, jnp.int8)
    x = jnp.pad(x, ((0, Tp - T), (0, Dp - D)))

    logits_padded = fused_transform_head(
        x, w_fold, b_fold, tm=tm, tn=tn, tk=tk, vmem_limit=vmem_limit
    )

    logits = logits_padded[:T, :vocab]
    transcript_tokens = jnp.argmax(logits, axis=-1)  # (T,)
    return transcript_tokens, logits


if __name__ == "__main__":
    # Small synthetic shapes: T=8 frames, H=W=16, C=3, vocab=32
    T, H, W, C = 8, 16, 16, 3
    VOCAB = 32
    key = jax.random.PRNGKey(0)
    k_vid, k_w, k_b = jax.random.split(key, 3)

    # Synthetic "decoded video" — uint8 THWC like torchvision.io.read_video.
    video_thwc = jax.random.randint(
        k_vid, (T, H, W, C), 0, 256, dtype=jnp.int32
    ).astype(jnp.uint8)

    # Deterministic stand-in "model" parameters (linear token head over the
    # flattened grayscale frame).
    D_hw = H * W
    w = jax.random.normal(k_w, (D_hw, VOCAB), dtype=jnp.float32) * 0.02
    b = jax.random.normal(k_b, (VOCAB,), dtype=jnp.float32) * 0.01

    vmem_cap = _vmem_capacity_bytes()
    vmem_limit = (vmem_cap * 3) // 4                      # 48 MiB on v7x, 96 MiB on v5e/v6e
    tile_budget = (vmem_limit * 7) // 8                   # headroom for Mosaic scratch
    tm, tn, tk = _choose_tiles(T, D_hw * C, VOCAB, tile_budget)
    w_fold, b_fold = fold_video_transform_into_head(w, b, channels=C, tn=tn, tk=tk)

    tokens, logits = inference_pipeline(
        video_thwc, w_fold, b_fold,
        vocab=VOCAB, tm=tm, tn=tn, tk=tk, vmem_limit=vmem_limit,
    )
    jax.block_until_ready((tokens, logits))

    # Sanity check against the original two-stage math (f32 reference); the
    # fused bf16-weight kernel differs only by rounding.
    xf = video_thwc.astype(jnp.float32)
    gray = _GRAY_R * xf[..., 0] + _GRAY_G * xf[..., 1] + _GRAY_B * xf[..., 2]
    feats = ((gray / 255.0 - _MEAN) / _STD).reshape(T, -1)
    ref_logits = feats @ w + b
    err = float(jnp.max(jnp.abs(logits - ref_logits)))
    assert err < 0.1, f"fused kernel mismatch: max|diff|={err}"
    assert tokens.shape == (T,)

    print("KERNEL_OK")
</pallas_src>

<mosaic_0001>
module attributes {stable_mosaic.version = 11 : i64} {
  func.func @fused_head_kernel(%arg0: i32, %arg1: i32, %arg2: i32, %arg3: memref<32x768xi8, #tpu.memory_space<vmem>>, %arg4: memref<768x128xbf16, #tpu.memory_space<vmem>>, %arg5: memref<1x128xf32, #tpu.memory_space<vmem>>, %arg6: memref<32x128xf32, #tpu.memory_space<vmem>>) attributes {dimension_semantics = [#tpu.dimension_semantics<parallel>, #tpu.dimension_semantics<parallel>, #tpu.dimension_semantics<arbitrary>], iteration_bounds = array<i64: 1, 1, 1>, scalar_prefetch = 0 : i64, scratch_operands = 0 : i64, tpu.core_type = #tpu.core_type<tc>, window_params = [{transform_indices = @transform_0, window_bounds = array<i64: 32, 768>}, {transform_indices = @transform_1, window_bounds = array<i64: 768, 128>}, {transform_indices = @transform_2, window_bounds = array<i64: 1, 128>}, {transform_indices = @transform_3, window_bounds = array<i64: 32, 128>}]} {
    %c0_i32 = arith.constant 0 : i32
    %0 = arith.cmpi eq, %arg2, %c0_i32 : i32
    %1 = arith.extui %0 : i1 to i32
    %c0_i32_0 = arith.constant 0 : i32
    %2 = arith.cmpi ne, %1, %c0_i32_0 : i32
    scf.if %2 {
      %c0_10 = arith.constant 0 : index
      %c0_11 = arith.constant 0 : index
      %16 = vector.load %arg5[%c0_10, %c0_11] : memref<1x128xf32, #tpu.memory_space<vmem>>, vector<1x128xf32>
      %17 = vector.shape_cast %16 : vector<1x128xf32> to vector<1x128xf32>
      %18 = vector.broadcast %17 : vector<1x128xf32> to vector<32x128xf32>
      %c0_12 = arith.constant 0 : index
      %c0_13 = arith.constant 0 : index
      %19 = vector.load %arg6[%c0_12, %c0_13] : memref<32x128xf32, #tpu.memory_space<vmem>>, vector<32x128xf32>
      tpu.vector_store %arg6[%c0_12, %c0_13], %18 {strides = array<i32>} : memref<32x128xf32, #tpu.memory_space<vmem>>, vector<32x128xf32>,
    } else {
    }
    %c0 = arith.constant 0 : index
    %c0_1 = arith.constant 0 : index
    %3 = vector.load %arg3[%c0, %c0_1] : memref<32x768xi8, #tpu.memory_space<vmem>>, vector<32x768xi8>
    %4 = arith.sitofp %3 : vector<32x768xi8> to vector<32x768xf32>
    %cst = arith.constant 0.000000e+00 : f32
    %5 = vector.broadcast %cst : f32 to vector<32x768xf32>
    %6 = arith.cmpf olt, %4, %5 : vector<32x768xf32>
    %cst_2 = arith.constant 2.560000e+02 : f32
    %7 = vector.broadcast %cst_2 : f32 to vector<32x768xf32>
    %8 = arith.addf %4, %7 : vector<32x768xf32>
    %9 = arith.select %6, %8, %4 : vector<32x768xi1>, vector<32x768xf32>
    %c0_3 = arith.constant 0 : index
    %c0_4 = arith.constant 0 : index
    %10 = vector.load %arg6[%c0_3, %c0_4] : memref<32x128xf32, #tpu.memory_space<vmem>>, vector<32x128xf32>
    %11 = arith.truncf %9 : vector<32x768xf32> to vector<32x768xbf16>
    %c0_5 = arith.constant 0 : index
    %c0_6 = arith.constant 0 : index
    %12 = vector.load %arg4[%c0_5, %c0_6] : memref<768x128xbf16, #tpu.memory_space<vmem>>, vector<768x128xbf16>
    %cst_7 = arith.constant dense<0.000000e+00> : vector<32x128xf32>
    %13 = tpu.matmul %11, %12, %cst_7 {dimension_numbers = #tpu.dot_dimension_numbers<[1], [0], [0], [1], [0, 0, 1, 1], [], []>} : vector<32x768xbf16>, vector<768x128xbf16>, vector<32x128xf32> -> vector<32x128xf32>
    %14 = arith.addf %10, %13 : vector<32x128xf32>
    %c0_8 = arith.constant 0 : index
    %c0_9 = arith.constant 0 : index
    %15 = vector.load %arg6[%c0_8, %c0_9] : memref<32x128xf32, #tpu.memory_space<vmem>>, vector<32x128xf32>
    tpu.vector_store %arg6[%c0_8, %c0_9], %14 {strides = array<i32>} : memref<32x128xf32, #tpu.memory_space<vmem>>, vector<32x128xf32>,
    return
  }
  func.func @transform_0(%arg0: i32, %arg1: i32, %arg2: i32) -> (i32, i32) {
    %c0_i32 = arith.constant 0 : i32
    return %arg0, %arg2 : i32, i32
  }
  func.func @transform_1(%arg0: i32, %arg1: i32, %arg2: i32) -> (i32, i32) {
    %c0_i32 = arith.constant 0 : i32
    return %arg2, %arg1 : i32, i32
  }
  func.func @transform_2(%arg0: i32, %arg1: i32, %arg2: i32) -> (i32, i32) {
    %c0_i32 = arith.constant 0 : i32
    %c0_i32_0 = arith.constant 0 : i32
    return %c0_i32, %arg1 : i32, i32
  }
  func.func @transform_3(%arg0: i32, %arg1: i32, %arg2: i32) -> (i32, i32) {
    %c0_i32 = arith.constant 0 : i32
    return %arg0, %arg1 : i32, i32
  }
}

</mosaic_0001>

<bundles_post_ra>
// kernel: inference_pipeline.1
= control target key start
LH: loop header
LB: loop body
LE: loop exit
PB: predicated region body
PF: predicated region fallthrough
CT: control target
= control target key end

     0   :  { %s1122_s1 = inlined_call_operand.vmem [shape: bf16[768,128], index: 1, kind: input, shape index: {}]   ;;  %s1123_s0 = inlined_call_operand.vmem [shape: s8[32,768], index: 0, kind: input, shape index: {}]   ;;  %s1124_s2 = inlined_call_operand.vmem [shape: f32[1,128], index: 2, kind: input, shape index: {}]   ;;  %s1125_s3 = inlined_call_operand.vmem [shape: f32[32,128], index: 3, kind: output, shape index: {}]  }
   0x1   :  { %v864_v0 = vld [vmem:[%s1122_s1 + $0x40] sm:$0xff]   ;;  %v868_v4 = vld [vmem:[%s1122_s1 + $0x48] sm:$0xff]   ;;  %v872_v8 = vld [vmem:[%s1122_s1 + $0x50] sm:$0xff]  }
   0x2   :  { %v865_v1 = vld [vmem:[%s1122_s1 + $0xc0] sm:$0xff]   ;;  %764 = vmatprep.subr.bf16.mxu0 %v864_v0  ;;  %v869_v5 = vld [vmem:[%s1122_s1 + $0xc8] sm:$0xff]   ;;  %v873_v9 = vld [vmem:[%s1122_s1 + $0xd0] sm:$0xff]  }
   0x3   :  { %v866_v2 = vld [vmem:[%s1122_s1] sm:$0xff]   ;;  %792 = vmatprep.subr.bf16.mxu1 %v865_v1  ;;  %v870_v6 = vld [vmem:[%s1122_s1 + $0x8] sm:$0xff]   ;;  %v874_v10 = vld [vmem:[%s1122_s1 + $0x10] sm:$0xff]  }
   0x4   :  { %v867_v3 = vld [vmem:[%s1122_s1 + $0x80] sm:$0xff]   ;;  %765 = vmatpush3.bf16.msra.mxu0 %v866_v2  ;;  %v871_v7 = vld [vmem:[%s1122_s1 + $0x88] sm:$0xff]   ;;  %v875_v11 = vld [vmem:[%s1122_s1 + $0x90] sm:$0xff]  }
   0x5   :  { %793 = vmatpush3.bf16.msra.mxu1 %v867_v3  ;;  %766 = vmatprep.subr.bf16.mxu0 %v868_v4  ;;  %v876_v12 = vld [vmem:[%s1122_s1 + $0x58] sm:$0xff]   ;;  %v880_v16 = vld [vmem:[%s1122_s1 + $0x60] sm:$0xff]   ;;  %v884_v20 = vld [vmem:[%s1122_s1 + $0x68] sm:$0xff]  }
   0x6   :  { %794 = vmatprep.subr.bf16.mxu1 %v869_v5  ;;  %v877_v13 = vld [vmem:[%s1122_s1 + $0xd8] sm:$0xff]   ;;  %v881_v17 = vld [vmem:[%s1122_s1 + $0xe0] sm:$0xff]   ;;  %v885_v21 = vld [vmem:[%s1122_s1 + $0xe8] sm:$0xff]  }
   0x7   :  { %v878_v14 = vld [vmem:[%s1122_s1 + $0x18] sm:$0xff]   ;;  %v882_v18 = vld [vmem:[%s1122_s1 + $0x20] sm:$0xff]   ;;  %v886_v22 = vld [vmem:[%s1122_s1 + $0x28] sm:$0xff]  }
   0x8   :  { %767 = vmatpush3.bf16.msra.mxu0 %v870_v6  ;;  %v879_v15 = vld [vmem:[%s1122_s1 + $0x98] sm:$0xff]   ;;  %v883_v19 = vld [vmem:[%s1122_s1 + $0xa0] sm:$0xff]   ;;  %v887_v23 = vld [vmem:[%s1122_s1 + $0xa8] sm:$0xff]  }
   0x9   :  { %795 = vmatpush3.bf16.msra.mxu1 %v871_v7  ;;  %768 = vmatprep.subr.bf16.mxu0 %v872_v8  ;;  %v888_v24 = vld [vmem:[%s1122_s1 + $0x70] sm:$0xff]   ;;  %v892_v28 = vld [vmem:[%s1122_s1 + $0x78] sm:$0xff]   ;;  %v31_v32 = vld [vmem:[%s1123_s0 + $0x8] sm:$0xff] }
   0xa   :  { %796 = vmatprep.subr.bf16.mxu1 %v873_v9  ;;  %v889_v25 = vld [vmem:[%s1122_s1 + $0xf0] sm:$0xff]   ;;  %v893_v29 = vld [vmem:[%s1122_s1 + $0xf8] sm:$0xff]   ;;  %v1037_v34 = vld [vmem:[%s1123_s0] sm:$0xff]  ;;  %v37_v35 = vunpack.c.0.s8 %v31_v32  ;;  %v43_v36 = vunpack.c.1.s8 %v31_v32  ;;  %v49_v4 = vunpack.c.2.s8 %v31_v32  ;;  %v55_v7 = vunpack.c.3.s8 %v31_v32 }
   0xb   :  { %v890_v26 = vld [vmem:[%s1122_s1 + $0x30] sm:$0xff]   ;;  %v894_v30 = vld [vmem:[%s1122_s1 + $0x38] sm:$0xff]   ;;  %v36_v40 = vunpack.c.0.s8 %v1037_v34  ;;  %v42_v41 = vunpack.c.1.s8 %v1037_v34  ;;  %v896_v44 = vld [vmem:[%s1122_s1 + $0x140] sm:$0xff]  }
   0xc   :  { %769 = vmatpush3.bf16.msra.mxu0 %v874_v10  ;;  %v891_v27 = vld [vmem:[%s1122_s1 + $0xb0] sm:$0xff]   ;;  %v895_v31 = vld [vmem:[%s1122_s1 + $0xb8] sm:$0xff]   ;;  %v61_v45 = vcvt.s32.f32 %v37_v35  ;;  %v67_v46 = vcvt.s32.f32 %v43_v36  ;;  %v897_v6 = vld [vmem:[%s1122_s1 + $0x100] sm:$0xff]  }
   0xd   :  { %797 = vmatpush3.bf16.msra.mxu1 %v875_v11  ;;  %770 = vmatprep.subr.bf16.mxu0 %v876_v12  ;;  %v33_v33 = vld [vmem:[%s1123_s0 + $0x18] sm:$0xff]  ;;  %v1042_v39 = vld [vmem:[%s1123_s0 + $0x10] sm:$0xff]  ;;  %v60_v49 = vcvt.s32.f32 %v36_v40  ;;  %v66_v50 = vcvt.s32.f32 %v42_v41 }
   0xe   :  { %798 = vmatprep.subr.bf16.mxu1 %v877_v13  ;;  %v39_v37 = vunpack.c.0.s8 %v33_v33  ;;  %v45_v38 = vunpack.c.1.s8 %v33_v33  ;;  %v38_v42 = vunpack.c.0.s8 %v1042_v39  ;;  %v44_v43 = vunpack.c.1.s8 %v1042_v39  ;;  %v898_v13 = vld [vmem:[%s1122_s1 + $0x148] sm:$0xff]   ;;  %v901_v36 = vld [vmem:[%s1122_s1 + $0x110] sm:$0xff]   ;;  %v902_v41 = vld [vmem:[%s1122_s1 + $0x158] sm:$0xff]  }
   0xf   :  { %vm85_vm0 = vcmp.lt.f32.partialorder %v61_v45, 0.0  ;;  %vm91_vm1 = vcmp.lt.f32.partialorder %v67_v46, 0.0  ;;  %v109_v53 = vadd.f32 256.0, %v61_v45  ;;  %v115_v54 = vadd.f32 256.0, %v67_v46 }
  0x10   :  { %771 = vmatpush3.bf16.msra.mxu0 %v878_v14  ;;  %v63_v47 = vcvt.s32.f32 %v39_v37  ;;  %v69_v48 = vcvt.s32.f32 %v45_v38  ;;  %v62_v51 = vcvt.s32.f32 %v38_v42  ;;  %v68_v52 = vcvt.s32.f32 %v44_v43  ;;  %v35_v43 = vld [vmem:[%s1123_s0 + $0x28] sm:$0xff] }
  0x11   :  { %799 = vmatpush3.bf16.msra.mxu1 %v879_v15  ;;  %772 = vmatprep.subr.bf16.mxu0 %v880_v16  ;;  %v133_v57 = vsel %vm85_vm0, %v109_v53, %v61_v45  ;;  %v139_v58 = vsel %vm91_vm1, %v115_v54, %v67_v46  ;;  %vm84_vm4 = vcmp.lt.f32.partialorder %v60_v49, 0.0  ;;  %vm90_vm5 = vcmp.lt.f32.partialorder %v66_v50, 0.0 }
  0x12   :  { %800 = vmatprep.subr.bf16.mxu1 %v881_v17  ;;  %vm87_vm2 = vcmp.lt.f32.partialorder %v63_v47, 0.0  ;;  %vm93_vm3 = vcmp.lt.f32.partialorder %v69_v48, 0.0  ;;  %v111_v55 = vadd.f32 256.0, %v63_v47  ;;  %v117_v56 = vadd.f32 256.0, %v69_v48 }
  0x13   :  { %v161_v59 = vpack.c.bf16 %v139_v58, %v133_v57  ;;  %v108_v62 = vadd.f32 256.0, %v60_v49  ;;  %v114_v0 = vadd.f32 256.0, %v66_v50  ;;  %vm86_vm6 = vcmp.lt.f32.partialorder %v62_v51, 0.0  ;;  %v34_v58 = vld [vmem:[%s1123_s0 + $0x20] sm:$0xff] }
  0x14   :  { %773 = vmatpush3.bf16.msra.mxu0 %v882_v18  ;;  %v135_v60 = vsel %vm87_vm2, %v111_v55, %v63_v47  ;;  %v141_v61 = vsel %vm93_vm3, %v117_v56, %v69_v48  ;;  %vm92_vm7 = vcmp.lt.f32.partialorder %v68_v52, 0.0  ;;  %v110_v2 = vadd.f32 256.0, %v62_v51  ;;  %v904_v55 = vld [vmem:[%s1122_s1 + $0x160] sm:$0xff]  }
  0x15   :  { %801 = vmatpush3.bf16.msra.mxu1 %v883_v19  ;;  %774 = vmatprep.subr.bf16.mxu0 %v884_v20  ;;  %v163_v63 = vpack.c.bf16 %v141_v61, %v135_v60  ;;  %v132_v1 = vsel %vm84_vm4, %v108_v62, %v60_v49  ;;  %v116_v3 = vadd.f32 256.0, %v68_v52  ;;  %v138_v5 = vsel %vm90_vm5, %v114_v0, %v66_v50  ;;  %v899_v19 = vld [vmem:[%s1122_s1 + $0x108] sm:$0xff]   ;;  %v900_v20 = vld [vmem:[%s1122_s1 + $0x150] sm:$0xff]   ;;  %v903_v50 = vld [vmem:[%s1122_s1 + $0x118] sm:$0xff]  }
  0x16   :  { %802 = vmatprep.subr.bf16.mxu1 %v885_v21  ;;  %588 = vmatprep.mubr.bf16.mxu0 %v161_v59  ;;  %v51_v8 = vunpack.c.2.s8 %v33_v33  ;;  %v57_v9 = vunpack.c.3.s8 %v33_v33  ;;  %v160_v10 = vpack.c.bf16 %v138_v5, %v132_v1  ;;  %v134_v11 = vsel %vm86_vm6, %v110_v2, %v62_v51  ;;  %v905_v1 = vld [vmem:[%s1122_s1 + $0x120] sm:$0xff]  }
  0x17   :  { %637 = vmatprep.mubr.bf16.mxu1 %v163_v63  ;;  %v140_v12 = vsel %vm92_vm7, %v116_v3, %v68_v52  ;;  %v73_v14 = vcvt.s32.f32 %v49_v4  ;;  %v79_v16 = vcvt.s32.f32 %v55_v7  ;;  %v56_v32 = vunpack.c.3.s8 %v1042_v39 }
  0x18   :  { %775 = vmatpush3.bf16.msra.mxu0 %v886_v22  ;;  %v162_v15 = vpack.c.bf16 %v140_v12, %v134_v11  ;;  %v75_v17 = vcvt.s32.f32 %v51_v8  ;;  %v81_v18 = vcvt.s32.f32 %v57_v9  ;;  %v48_v22 = vunpack.c.2.s8 %v1037_v34 }
  0x19   :  { %803 = vmatpush3.bf16.msra.mxu1 %v887_v23  ;;  %776 = vmatprep.subr.bf16.mxu0 %v888_v24  ;;  %vm97_vm8 = vcmp.lt.f32.partialorder %v73_v14, 0.0  ;;  %v121_v21 = vadd.f32 256.0, %v73_v14  ;;  %v54_v23 = vunpack.c.3.s8 %v1037_v34  ;;  %vm103_vm9 = vcmp.lt.f32.partialorder %v79_v16, 0.0 }
  0x1a   :  { %804 = vmatprep.subr.bf16.mxu1 %v889_v25  ;;  %v127_v24 = vadd.f32 256.0, %v79_v16  ;;  %vm99_vm10 = vcmp.lt.f32.partialorder %v75_v17, 0.0  ;;  %vm105_vm11 = vcmp.lt.f32.partialorder %v81_v18, 0.0  ;;  %v80_v42 = vcvt.s32.f32 %v56_v32 }
  0x1b   :  { %v145_v25 = vsel %vm97_vm8, %v121_v21, %v73_v14  ;;  %v41_v46 = vunpack.c.0.s8 %v35_v43  ;;  %v47_v47 = vunpack.c.1.s8 %v35_v43  ;;  %v53_v54 = vunpack.c.2.s8 %v35_v43  ;;  %v909_v21 = vld [vmem:[%s1122_s1 + $0x130] sm:$0xff]  }
  0x1c   :  { %777 = vmatpush3.bf16.msra.mxu0 %v890_v26  ;;  %v123_v26 = vadd.f32 256.0, %v75_v17  ;;  %vm104_vm15 = vcmp.lt.f32.partialorder %v80_v42, 0.0  ;;  %v128_v51 = vadd.f32 256.0, %v80_v42  ;;  %v59_v57 = vunpack.c.3.s8 %v35_v43 }
  0x1d   :  { %805 = vmatpush3.bf16.msra.mxu1 %v891_v27  ;;  %778 = vmatprep.subr.bf16.mxu0 %v892_v28  ;;  %v129_v27 = vadd.f32 256.0, %v81_v18  ;;  %v72_v28 = vcvt.s32.f32 %v48_v22  ;;  %v65_v52 = vcvt.s32.f32 %v41_v46  ;;  %v71_v53 = vcvt.s32.f32 %v47_v47 }
  0x1e   :  { %806 = vmatprep.subr.bf16.mxu1 %v893_v29  ;;  %v151_v29 = vsel %vm103_vm9, %v127_v24, %v79_v16  ;;  %v147_v34 = vsel %vm99_vm10, %v123_v26, %v75_v17  ;;  %v152_v59 = vsel %vm104_vm15, %v128_v51, %v80_v42  ;;  %v77_v63 = vcvt.s32.f32 %v53_v54  ;;  %v908_v17 = vld [vmem:[%s1122_s1 + $0x170] sm:$0xff]   ;;  %v910_v24 = vld [vmem:[%s1122_s1 + $0x178] sm:$0xff]  }
  0x1f   :  { %v167_v33 = vpack.c.bf16 %v151_v29, %v145_v25  ;;  %v153_v35 = vsel %vm105_vm11, %v129_v27, %v81_v18  ;;  %vm96_vm12 = vcmp.lt.f32.partialorder %v72_v28, 0.0  ;;  %v120_v38 = vadd.f32 256.0, %v72_v28  ;;  %v911_v27 = vld [vmem:[%s1122_s1 + $0x138] sm:$0xff]  }
  0x20   :  { %779 = vmatpush3.bf16.msra.mxu0 %v894_v30  ;;  %v78_v30 = vcvt.s32.f32 %v54_v23  ;;  %v169_v37 = vpack.c.bf16 %v153_v35, %v147_v34  ;;  %vm89_vm0 = vcmp.lt.f32.partialorder %v65_v52, 0.0  ;;  %vm95_vm1 = vcmp.lt.f32.partialorder %v71_v53, 0.0 }
  0x21   :  { %807 = vmatpush3.bf16.msra.mxu1 %v895_v31  ;;  %820 = vmatprep.subr.bf16.mxu0 %v896_v44  ;;  %v50_v31 = vunpack.c.2.s8 %v1042_v39  ;;  %v113_v60 = vadd.f32 256.0, %v65_v52  ;;  %v119_v62 = vadd.f32 256.0, %v71_v53  ;;  %v83_v0 = vcvt.s32.f32 %v59_v57 }
  0x22   :  { %848 = vmatprep.subr.bf16.mxu1 %v896_v44  ;;  %vm102_vm13 = vcmp.lt.f32.partialorder %v78_v30, 0.0  ;;  %v126_v40 = vadd.f32 256.0, %v78_v30  ;;  %v144_v44 = vsel %vm96_vm12, %v120_v38, %v72_v28  ;;  %v40_v3 = vunpack.c.0.s8 %v34_v58 }
  0x23   :  { %589 = vmatmul.mubr.bf16.vlgmr.msra.gmra.mrb[0].mxu0 %v160_v10  ;;  %v74_v39 = vcvt.s32.f32 %v50_v31  ;;  %v137_v2 = vsel %vm89_vm0, %v113_v60, %v65_v52  ;;  %v46_v4 = vunpack.c.1.s8 %v34_v58  ;;  %v52_v5 = vunpack.c.2.s8 %v34_v58 }
  0x24   :  { %638 = vmatmul.mubr.bf16.vlgmr.msra.gmra.mrb[0].mxu1 %v162_v15  ;;  %821 = vmatpush3.bf16.msra.mxu0 %v897_v6  ;;  %v150_v45 = vsel %vm102_vm13, %v126_v40, %v78_v30  ;;  %v143_v7 = vsel %vm95_vm1, %v119_v62, %v71_v53  ;;  %vm101_vm2 = vcmp.lt.f32.partialorder %v77_v63, 0.0  ;;  %vm107_vm3 = vcmp.lt.f32.partialorder %v83_v0, 0.0 }
  0x25   :  { %856 = vmatpush3.bf16.msra.mxu1 %v897_v6  ;;  %822 = vmatprep.subr.bf16.mxu0 %v898_v13  ;;  %v166_v48 = vpack.c.bf16 %v150_v45, %v144_v44  ;;  %vm98_vm14 = vcmp.lt.f32.partialorder %v74_v39, 0.0  ;;  %v122_v49 = vadd.f32 256.0, %v74_v39  ;;  %v906_v6 = vld [vmem:[%s1122_s1 + $0x168] sm:$0xff]   ;;  %v125_v8 = vadd.f32 256.0, %v77_v63 }
  0x26   :  { %849 = vmatprep.subr.bf16.mxu1 %v898_v13  ;;  %596 = vmatprep.mubr.bf16.mxu0 %v167_v33  ;;  %v165_v9 = vpack.c.bf16 %v143_v7, %v137_v2  ;;  %v131_v10 = vadd.f32 256.0, %v83_v0  ;;  %v58_v12 = vunpack.c.3.s8 %v34_v58  ;;  %v907_v13 = vld [vmem:[%s1122_s1 + $0x128] sm:$0xff]   ;;  %v64_v15 = vcvt.s32.f32 %v40_v3 }
  0x27   :  { %645 = vmatprep.mubr.bf16.mxu1 %v169_v37  ;;  %v146_v56 = vsel %vm98_vm14, %v122_v49, %v74_v39  ;;  %v149_v11 = vsel %vm101_vm2, %v125_v8, %v77_v63  ;;  %v70_v16 = vcvt.s32.f32 %v46_v4  ;;  %v715_v4 = vld [vmem:[%s1124_s2] ss:$0 sm:$0xff] }
  0x28   :  { %823 = vmatpush3.bf16.msra.mxu0 %v899_v19  ;;  %v168_v61 = vpack.c.bf16 %v152_v59, %v146_v56  ;;  %v155_v14 = vsel %vm107_vm3, %v131_v10, %v83_v0  ;;  %v112_v22 = vadd.f32 256.0, %v64_v15  ;;  %vm88_vm4 = vcmp.lt.f32.partialorder %v64_v15, 0.0 }
  0x29   :  { %857 = vmatpush3.bf16.msra.mxu1 %v899_v19  ;;  %824 = vmatprep.subr.bf16.mxu0 %v900_v20  ;;  %v171_v18 = vpack.c.bf16 %v155_v14, %v149_v11  ;;  %v76_v19 = vcvt.s32.f32 %v52_v5  ;;  %v118_v23 = vadd.f32 256.0, %v70_v16  ;;  %vm94_vm5 = vcmp.lt.f32.partialorder %v70_v16, 0.0 }
  0x2a   :  { %850 = vmatprep.subr.bf16.mxu1 %v900_v20  ;;  %v82_v20 = vcvt.s32.f32 %v58_v12  ;;  %v136_v28 = vsel %vm88_vm4, %v112_v22, %v64_v15 }
  0x2b   :  { %597 = vmatmul.mubr.bf16.gmra.mrb[4].mxu0 %v166_v48  ;;  %v124_v25 = vadd.f32 256.0, %v76_v19  ;;  %vm100_vm6 = vcmp.lt.f32.partialorder %v76_v19, 0.0  ;;  %v142_v29 = vsel %vm94_vm5, %v118_v23, %v70_v16 }
  0x2c   :  { %825 = vmatpush3.bf16.msra.mxu0 %v901_v36  ;;  %646 = vmatmul.mubr.bf16.gmra.mrb[4].mxu1 %v168_v61  ;;  %v130_v26 = vadd.f32 256.0, %v82_v20  ;;  %vm106_vm7 = vcmp.lt.f32.partialorder %v82_v20, 0.0  ;;  %v164_v32 = vpack.c.bf16 %v142_v29, %v136_v28 }
  0x2d   :  { %858 = vmatpush3.bf16.msra.mxu1 %v901_v36  ;;  %826 = vmatprep.subr.bf16.mxu0 %v902_v41  ;;  %v148_v30 = vsel %vm100_vm6, %v124_v25, %v76_v19 }
  0x2e   :  { %851 = vmatprep.subr.bf16.mxu1 %v902_v41  ;;  %686 = vmatprep.mubr.bf16.mxu0 %v165_v9  ;;  %v154_v31 = vsel %vm106_vm7, %v130_v26, %v82_v20 }
  0x2f   :  { %694 = vmatprep.mubr.bf16.mxu1 %v171_v18  ;;  %v170_v33 = vpack.c.bf16 %v154_v31, %v148_v30 }
  0x30   :  { %827 = vmatpush3.bf16.msra.mxu0 %v903_v50 }
  0x31   :  { %859 = vmatpush3.bf16.msra.mxu1 %v903_v50  ;;  %828 = vmatprep.subr.bf16.mxu0 %v904_v55 }
  0x32   :  { %852 = vmatprep.subr.bf16.mxu1 %v904_v55 }
  0x34   :  { %829 = vmatpush3.bf16.msra.mxu0 %v905_v1 }
  0x35   :  { %860 = vmatpush3.bf16.msra.mxu1 %v905_v1  ;;  %830 = vmatprep.subr.bf16.mxu0 %v906_v6 }
  0x36   :  { %853 = vmatprep.subr.bf16.mxu1 %v906_v6 }
  0x38   :  { %831 = vmatpush3.bf16.msra.mxu0 %v907_v13 }
  0x39   :  { %861 = vmatpush3.bf16.msra.mxu1 %v907_v13  ;;  %832 = vmatprep.subr.bf16.mxu0 %v908_v17 }
  0x3a   :  { %854 = vmatprep.subr.bf16.mxu1 %v908_v17 }
  0x3c   :  { %833 = vmatpush3.bf16.msra.mxu0 %v909_v21 }
  0x3d   :  { %862 = vmatpush3.bf16.msra.mxu1 %v909_v21  ;;  %834 = vmatprep.subr.bf16.mxu0 %v910_v24 }
  0x3e   :  { %855 = vmatprep.subr.bf16.mxu1 %v910_v24 }
  0x40   :  { %835 = vmatpush3.bf16.msra.mxu0 %v911_v27 }
  0x41   :  { %863 = vmatpush3.bf16.msra.mxu1 %v911_v27 }
  0x43   :  { %687 = vmatmul.mubr.bf16.vlgmr.msra.gmra.mrb[8].mxu0 %v164_v32 }
  0x44   :  { %695 = vmatmul.mubr.bf16.vlgmr.msra.gmra.mrb[8].mxu1 %v170_v33 }
  0xf6   :  { %v780_v34 = vpop.f32.mrb[0].mxu0 }
  0xf7   :  { %v808_v35 = vpop.f32.mrb[0].mxu1  ;;  %v781_v36 = vpop.f32.mrb[1].mxu0 }
  0xf8   :  { %v782_v37 = vadd.f32 %v781_v36, %v780_v34  ;;  %v809_v38 = vpop.f32.mrb[1].mxu1  ;;  %v783_v40 = vpop.f32.mrb[2].mxu0 }
  0xf9   :  { %v810_v41 = vadd.f32 %v809_v38, %v808_v35  ;;  %v811_v39 = vpop.f32.mrb[2].mxu1  ;;  %v784_v42 = vpop.f32.mrb[3].mxu0 }
  0xfa   :  { %v785_v43 = vadd.f32 %v784_v42, %v783_v40  ;;  %v812_v44 = vpop.f32.mrb[3].mxu1 }
  0xfb   :  { %v640_v45 = vadd.f32 %v810_v41, %v782_v37  ;;  %v813_v46 = vadd.f32 %v812_v44, %v811_v39 }
  0xfd   :  { %v643_v47 = vadd.f32 %v813_v46, %v785_v43 }
  0xfe   :  { %v786_v48 = vpop.f32.mrb[4].mxu0 }
  0xff   :  { %v787_v49 = vpop.f32.mrb[5].mxu0  ;;  %v814_v53 = vpop.f32.mrb[4].mxu1 }
 0x100   :  { %v788_v50 = vadd.f32 %v787_v49, %v786_v48  ;;  %v789_v51 = vpop.f32.mrb[6].mxu0  ;;  %v815_v55 = vpop.f32.mrb[5].mxu1 }
 0x101   :  { %v790_v52 = vpop.f32.mrb[7].mxu0  ;;  %v816_v56 = vadd.f32 %v815_v55, %v814_v53  ;;  %v817_v57 = vpop.f32.mrb[6].mxu1 }
 0x102   :  { %v791_v54 = vadd.f32 %v790_v52, %v789_v51  ;;  %v818_v58 = vpop.f32.mrb[7].mxu1 }
 0x103   :  { %v648_v59 = vadd.f32 %v816_v56, %v788_v50  ;;  %v819_v60 = vadd.f32 %v818_v58, %v817_v57 }
 0x105   :  { %v651_v61 = vadd.f32 %v819_v60, %v791_v54 }
 0x116   :  { %v836_v62 = vpop.f32.mrb[8].mxu0 }
 0x117   :  { %v842_v63 = vpop.f32.mrb[8].mxu1  ;;  %v837_v0 = vpop.f32.mrb[9].mxu0 }
 0x118   :  { %v838_v1 = vadd.f32 %v837_v0, %v836_v62  ;;  %v843_v2 = vpop.f32.mrb[9].mxu1  ;;  %v839_v3 = vpop.f32.mrb[10].mxu0 }
 0x119   :  { %v844_v5 = vadd.f32 %v843_v2, %v842_v63  ;;  %v845_v6 = vpop.f32.mrb[10].mxu1  ;;  %v840_v7 = vpop.f32.mrb[11].mxu0 }
 0x11a   :  { %v689_v8 = vadd.f32 %v838_v1, %v640_v45  ;;  %v841_v9 = vadd.f32 %v840_v7, %v839_v3  ;;  %v846_v10 = vpop.f32.mrb[11].mxu1 }
 0x11b   :  { %v697_v11 = vadd.f32 %v844_v5, %v648_v59  ;;  %v847_v12 = vadd.f32 %v846_v10, %v845_v6 }
 0x11c   :  { %v703_v13 = vadd.f32 %v715_v4, %v689_v8  ;;  %v692_v14 = vadd.f32 %v841_v9, %v643_v47 }
 0x11d   :  { %v705_v15 = vadd.f32 %v715_v4, %v697_v11  ;;  %v700_v16 = vadd.f32 %v847_v12, %v651_v61 }
 0x11e   :  { %707 = vst [vmem:[%s1125_s3] sm:$0xff] %v703_v13  ;;  %v704_v17 = vadd.f32 %v715_v4, %v692_v14 }
 0x11f   :  { %709 = vst [vmem:[%s1125_s3 + $0x10] sm:$0xff] %v705_v15  ;;  %v706_v18 = vadd.f32 %v715_v4, %v700_v16 }
 0x120   :  { %708 = vst [vmem:[%s1125_s3 + $0x8] sm:$0xff] %v704_v17 }
 0x121   :  { %710 = vst [vmem:[%s1125_s3 + $0x18] sm:$0xff] %v706_v18 }

</bundles_post_ra>
